<compile_context>
chip_gen: v6e
topology: v6e:2x2x1
jax: 0.10.0
libtpu: 0.0.40
codegen_flags: <defaults>
</compile_context>

<pallas_src>
import functools

import jax
import jax.numpy as jnp
from jax.experimental import pallas as pl
from jax.experimental.pallas import tpu as pltpu


def resblock_kernel(x_ref, w_ref, b_ref, out_ref, *, kh_size, kw_size, width):
    # x_ref:   (Cpad, N*H*W)       channels on sublanes, batch+space on lanes
    # w_ref:   (Cout, KH*KW*Cpad)  fused (conv1 . (W2+I)) im2col weights, f32
    # b_ref:   (Cout, 1)           fused bias, f32
    # out_ref: (Cout, N*H*W)       full-frame result; wrapper keeps VALID window
    x = x_ref[...].astype(jnp.float32)             # (Cpad, N*H*W)
    total = x.shape[-1]

    # im2col: tap (kh, kw) of a VALID conv at flat position m = h*W + w reads
    # x_flat[m + kh*W + kw]; a circular lane-roll reproduces that for every
    # valid output position (wrap-around only lands at positions the wrapper
    # discards).  Each tap is a full 8-sublane group, so the concat is
    # vreg-aligned (no sublane re-packing).
    taps = []
    for kh in range(kh_size):
        for kw in range(kw_size):
            s = kh * width + kw
            taps.append(x if s == 0
                        else pltpu.roll(x, shift=(total - s) % total, axis=1))
    patches = jnp.concatenate(taps, axis=0)        # (KH*KW*Cpad, N*H*W)

    # Single fused 2-D MXU matmul: (Cout, K) x (K, N*H*W) -> (Cout, N*H*W).
    out = jax.lax.dot_general(
        w_ref[...], patches,
        dimension_numbers=(((1,), (0,)), ((), ())),
        preferred_element_type=jnp.float32)
    out_ref[...] = (out + b_ref[...]).astype(out_ref.dtype)


def fold_params(w1, b1, w2, b2):
    """Fold conv2 (1x1) + residual into conv1's weights/bias.  Run ONCE at
    module init (hoisted off the per-forward hot path).  Returns f32 operands
    -- never downcast these to the activation dtype."""
    f32 = jnp.float32
    Cout, Cin, KH, KW = w1.shape
    Cpad = ((Cin + 7) // 8) * 8                                   # 8-sublane align
    A = w2[:, :, 0, 0].astype(f32) + jnp.eye(Cout, dtype=f32)     # (Cout, Cout)
    wf = jnp.einsum('ab,bikl->aikl', A, w1.astype(f32))           # (Cout, Cin, KH, KW)
    wf = jnp.pad(wf, ((0, 0), (0, Cpad - Cin), (0, 0), (0, 0)))   # (Cout, Cpad, KH, KW)
    # K ordered (kh, kw, ci) to match the kernel's tap-concat order.
    w2d = jnp.transpose(wf, (0, 2, 3, 1)).reshape(Cout, KH * KW * Cpad)
    bf = (A @ b1.astype(f32) + b2.astype(f32)).reshape(Cout, 1)
    return w2d, bf


@functools.partial(jax.jit, static_argnames=("kh", "kw"))
def residual_block_small_forward(x_nchw, w2d, bf, *, kh=3, kw=3):
    """x_nchw: (N, Cin, H, W); w2d/bf: folded f32 params from fold_params."""
    # TODO(synk): only stride=1, padding=0 (the module defaults) are implemented.
    N, Cin, H, W = x_nchw.shape
    Cout = w2d.shape[0]
    Cpad = w2d.shape[1] // (kh * kw)
    Ho, Wo = H - kh + 1, W - kw + 1
    NHW = N * H * W

    # Roll-based im2col is only valid on an UNTILED flattened spatial axis with
    # padding=0: every wrapped lane must land outside the VALID window.
    assert (Ho - 1) * W + (Wo - 1) + (kh - 1) * W + (kw - 1) <= H * W - 1
    assert Cin <= Cpad

    # Channel-on-sublane, (batch x space)-on-lane layout: (Cpad, N*H*W).
    x_cp = jnp.pad(x_nchw, ((0, 0), (0, Cpad - Cin), (0, 0), (0, 0)))
    x_flat = jnp.transpose(x_cp, (1, 0, 2, 3)).reshape(Cpad, NHW)

    kernel = functools.partial(resblock_kernel, kh_size=kh, kw_size=kw, width=W)
    out_flat = pl.pallas_call(
        kernel,
        out_shape=jax.ShapeDtypeStruct((Cout, NHW), x_nchw.dtype),
        grid=(1,),                               # whole batch in one invocation
        in_specs=[
            pl.BlockSpec((Cpad, NHW), lambda i: (0, 0)),
            pl.BlockSpec((Cout, kh * kw * Cpad), lambda i: (0, 0)),
            pl.BlockSpec((Cout, 1), lambda i: (0, 0)),
        ],
        out_specs=pl.BlockSpec((Cout, NHW), lambda i: (0, 0)),
    )(x_flat, w2d, bf)

    # Free reshape + tiny transpose/slice back to NCHW VALID window.
    out = jnp.transpose(out_flat.reshape(Cout, N, H, W), (1, 0, 2, 3))
    return out[:, :, :Ho, :Wo]


def _reference(x, w1, b1, w2, b2):
    dn = ('NCHW', 'OIHW', 'NCHW')
    out1 = jax.lax.conv_general_dilated(x, w1, (1, 1), 'VALID',
                                        dimension_numbers=dn)
    out1 = out1 + b1[None, :, None, None]
    out = jax.lax.conv_general_dilated(out1, w2, (1, 1), 'VALID',
                                       dimension_numbers=dn)
    out = out + b2[None, :, None, None] + out1
    return out


if __name__ == "__main__":
    key = jax.random.PRNGKey(0)
    k_x, k_w1, k_b1, k_w2, k_b2 = jax.random.split(key, 5)

    N, Cin, Cout, H, W = 2, 4, 8, 16, 16

    x = jax.random.normal(k_x, (N, Cin, H, W), dtype=jnp.float32)
    w1 = jax.random.normal(k_w1, (Cout, Cin, 3, 3), dtype=jnp.float32) * 0.1
    b1 = jax.random.normal(k_b1, (Cout,), dtype=jnp.float32) * 0.1
    w2 = jax.random.normal(k_w2, (Cout, Cout, 1, 1), dtype=jnp.float32) * 0.1
    b2 = jax.random.normal(k_b2, (Cout,), dtype=jnp.float32) * 0.1

    # Weight fold done once at init; the pallas_call is the only hot-path op.
    w2d, bf = jax.block_until_ready(fold_params(w1, b1, w2, b2))

    out = residual_block_small_forward(x, w2d, bf, kh=3, kw=3)
    out = jax.block_until_ready(out)

    ref = _reference(x, w1, b1, w2, b2)
    assert out.shape == (N, Cout, H - 2, W - 2), out.shape
    assert jnp.allclose(out, ref, atol=1e-4, rtol=1e-4), "mismatch vs reference"

    print("KERNEL_OK")
</pallas_src>

<mosaic_0001>
module attributes {stable_mosaic.version = 11 : i64} {
  func.func @resblock_kernel(%arg0: i32, %arg1: memref<8x512xf32, #tpu.memory_space<vmem>>, %arg2: memref<8x72xf32, #tpu.memory_space<vmem>>, %arg3: memref<8x1xf32, #tpu.memory_space<vmem>>, %arg4: memref<8x512xf32, #tpu.memory_space<vmem>>) attributes {dimension_semantics = [#tpu.dimension_semantics<arbitrary>], iteration_bounds = array<i64: 1>, scalar_prefetch = 0 : i64, scratch_operands = 0 : i64, tpu.core_type = #tpu.core_type<tc>, window_params = [{pipeline_mode = #tpu.pipeline_mode<synchronous>, transform_indices = @transform_0, window_bounds = array<i64: 8, 512>}, {pipeline_mode = #tpu.pipeline_mode<synchronous>, transform_indices = @transform_1, window_bounds = array<i64: 8, 72>}, {pipeline_mode = #tpu.pipeline_mode<synchronous>, transform_indices = @transform_2, window_bounds = array<i64: 8, 1>}, {pipeline_mode = #tpu.pipeline_mode<synchronous>, transform_indices = @transform_3, window_bounds = array<i64: 8, 512>}]} {
    %c0 = arith.constant 0 : index
    %c0_0 = arith.constant 0 : index
    %0 = vector.load %arg1[%c0, %c0_0] : memref<8x512xf32, #tpu.memory_space<vmem>>, vector<8x512xf32>
    %c511_i32 = arith.constant 511 : i32
    %1 = tpu.dynamic_rotate %0 by %c511_i32 dim 1 : vector<8x512xf32>, i32 -> vector<8x512xf32>
    %c510_i32 = arith.constant 510 : i32
    %2 = tpu.dynamic_rotate %0 by %c510_i32 dim 1 : vector<8x512xf32>, i32 -> vector<8x512xf32>
    %c496_i32 = arith.constant 496 : i32
    %3 = tpu.dynamic_rotate %0 by %c496_i32 dim 1 : vector<8x512xf32>, i32 -> vector<8x512xf32>
    %c495_i32 = arith.constant 495 : i32
    %4 = tpu.dynamic_rotate %0 by %c495_i32 dim 1 : vector<8x512xf32>, i32 -> vector<8x512xf32>
    %c494_i32 = arith.constant 494 : i32
    %5 = tpu.dynamic_rotate %0 by %c494_i32 dim 1 : vector<8x512xf32>, i32 -> vector<8x512xf32>
    %c480_i32 = arith.constant 480 : i32
    %6 = tpu.dynamic_rotate %0 by %c480_i32 dim 1 : vector<8x512xf32>, i32 -> vector<8x512xf32>
    %c479_i32 = arith.constant 479 : i32
    %7 = tpu.dynamic_rotate %0 by %c479_i32 dim 1 : vector<8x512xf32>, i32 -> vector<8x512xf32>
    %c478_i32 = arith.constant 478 : i32
    %8 = tpu.dynamic_rotate %0 by %c478_i32 dim 1 : vector<8x512xf32>, i32 -> vector<8x512xf32>
    %9 = tpu.concatenate %0, %1, %2, %3, %4, %5, %6, %7, %8 in 0 : vector<8x512xf32>, vector<8x512xf32>, vector<8x512xf32>, vector<8x512xf32>, vector<8x512xf32>, vector<8x512xf32>, vector<8x512xf32>, vector<8x512xf32>, vector<8x512xf32> -> vector<72x512xf32>
    %c0_1 = arith.constant 0 : index
    %c0_2 = arith.constant 0 : index
    %10 = vector.load %arg2[%c0_1, %c0_2] : memref<8x72xf32, #tpu.memory_space<vmem>>, vector<8x72xf32>
    %cst = arith.constant dense<0.000000e+00> : vector<8x512xf32>
    %11 = tpu.matmul %10, %9, %cst {dimension_numbers = #tpu.dot_dimension_numbers<[1], [0], [0], [1], [0, 0, 1, 1], [], []>} : vector<8x72xf32>, vector<72x512xf32>, vector<8x512xf32> -> vector<8x512xf32>
    %c0_3 = arith.constant 0 : index
    %c0_4 = arith.constant 0 : index
    %12 = vector.load %arg3[%c0_3, %c0_4] : memref<8x1xf32, #tpu.memory_space<vmem>>, vector<8x1xf32>
    %13 = vector.broadcast %12 : vector<8x1xf32> to vector<8x512xf32>
    %14 = arith.addf %11, %13 : vector<8x512xf32>
    %c0_5 = arith.constant 0 : index
    %c0_6 = arith.constant 0 : index
    %15 = vector.load %arg4[%c0_5, %c0_6] : memref<8x512xf32, #tpu.memory_space<vmem>>, vector<8x512xf32>
    tpu.vector_store %arg4[%c0_5, %c0_6], %14 {strides = array<i32>} : memref<8x512xf32, #tpu.memory_space<vmem>>, vector<8x512xf32>,
    return
  }
  func.func @transform_0(%arg0: i32) -> (i32, i32) {
    %c0_i32 = arith.constant 0 : i32
    %c0_i32_0 = arith.constant 0 : i32
    %c0_i32_1 = arith.constant 0 : i32
    return %c0_i32, %c0_i32_0 : i32, i32
  }
  func.func @transform_1(%arg0: i32) -> (i32, i32) {
    %c0_i32 = arith.constant 0 : i32
    %c0_i32_0 = arith.constant 0 : i32
    %c0_i32_1 = arith.constant 0 : i32
    return %c0_i32, %c0_i32_0 : i32, i32
  }
  func.func @transform_2(%arg0: i32) -> (i32, i32) {
    %c0_i32 = arith.constant 0 : i32
    %c0_i32_0 = arith.constant 0 : i32
    %c0_i32_1 = arith.constant 0 : i32
    return %c0_i32, %c0_i32_0 : i32, i32
  }
  func.func @transform_3(%arg0: i32) -> (i32, i32) {
    %c0_i32 = arith.constant 0 : i32
    %c0_i32_0 = arith.constant 0 : i32
    %c0_i32_1 = arith.constant 0 : i32
    return %c0_i32, %c0_i32_0 : i32, i32
  }
}

</mosaic_0001>

<bundles_post_ra>
// kernel: residual_block_small_forward.1
= control target key start
LH: loop header
LB: loop body
LE: loop exit
PB: predicated region body
PF: predicated region fallthrough
CT: control target
= control target key end

     0   :  { %s298_s16 = smov 94   ;;  %s299_s21 = smov 95   ;;  %v305_v4 = vmov 0.0   ;;  %v306_v5 = vmov 0   ;;  %v26_v7 = vlaneseq  ;;  %vm131_vm8 = vcmask 588800   ;;  %s412_s0 = inlined_call_operand.vmem [shape: f32[8,512], index: 0, kind: input, shape index: {}]   ;;  %s413_s2 = inlined_call_operand.vmem [shape: f32[8,1], index: 2, kind: input, shape index: {}]   ;;  %s414_s1 = inlined_call_operand.vmem [shape: f32[8,72], index: 1, kind: input, shape index: {}]   ;;  %s415_s3 = inlined_call_operand.vmem [shape: f32[8,512], index: 3, kind: output, shape index: {}]  }
   0x1   :  { %v331_v0 = vld [vmem:[%s412_s0 + $0x10] sm:$0xff]  ;;  %v336_v1 = vld [vmem:[%s412_s0] sm:$0xff]  ;;  %v343_v2 = vld [vmem:[%s412_s0 + $0x18] sm:$0xff]  ;;  %s300_s22 = smov 96   ;;  %s302_s23 = smov 111   ;;  %199 = vmatprep.mubr.f32.mxu0 %v305_v4  ;;  %270 = vmatprep.mubr.f32.mxu1 %v305_v4 }
   0x2   :  { %115 = vrot.lane.b32.xlu1 %v331_v0, %s298_s16  ;;  %111 = vrot.lane.b32.xlu0 %v336_v1, %s298_s16  ;;  %v348_v3 = vld [vmem:[%s412_s0 + $0x8] sm:$0xff]  ;;  %s301_s0 = smov 110   ;;  %s303_s24 = smov 112   ;;  %v125_v6 = vld [vmem:[%s413_s2] sm:$0xff]  ;;  %v383_v8 = vand.u32 127, %v26_v7 }
   0x3   :  { %s304_s25 = smov 126   ;;  %297 = vset.pattern.permute.xlu0 %v306_v5  ;;  %s307_s26 = smov 127  }
   0x4   :  { %vm119_vm0 = vcmp.lt.s32.totalorder %v383_v8, 94  ;;  %vm106_vm1 = vcmp.lt.s32.totalorder %v383_v8, 95  ;;  %vm93_vm2 = vcmp.lt.s32.totalorder %v383_v8, 96  ;;  %vm80_vm3 = vcmp.lt.s32.totalorder %v383_v8, 110 }
   0x5   :  { %vm67_vm4 = vcmp.lt.s32.totalorder %v383_v8, 111  ;;  %vm54_vm5 = vcmp.lt.s32.totalorder %v383_v8, 112  ;;  %vm41_vm6 = vcmp.lt.s32.totalorder %v383_v8, 126  ;;  %vm28_vm7 = vcmp.lt.s32.totalorder %v383_v8, 127 }
   0x6   :  { %117 = vrot.lane.b32.xlu1 %v343_v2, %s298_s16  ;;  %113 = vrot.lane.b32.xlu0 %v348_v3, %s298_s16 }
   0xa   :  { %100 = vrot.lane.b32.xlu1 %v348_v3, %s299_s21  ;;  %98 = vrot.lane.b32.xlu0 %v336_v1, %s299_s21 }
   0xe   :  { %104 = vrot.lane.b32.xlu1 %v343_v2, %s299_s21  ;;  %102 = vrot.lane.b32.xlu0 %v331_v0, %s299_s21 }
  0x12   :  { %87 = vrot.lane.b32.xlu1 %v348_v3, %s300_s22  ;;  %85 = vrot.lane.b32.xlu0 %v336_v1, %s300_s22 }
  0x16   :  { %91 = vrot.lane.b32.xlu1 %v343_v2, %s300_s22  ;;  %89 = vrot.lane.b32.xlu0 %v331_v0, %s300_s22 }
  0x1a   :  { %74 = vrot.lane.b32.xlu1 %v348_v3, %s301_s0  ;;  %72 = vrot.lane.b32.xlu0 %v336_v1, %s301_s0 }
  0x1e   :  { %78 = vrot.lane.b32.xlu1 %v343_v2, %s301_s0  ;;  %76 = vrot.lane.b32.xlu0 %v331_v0, %s301_s0 }
  0x22   :  { %61 = vrot.lane.b32.xlu1 %v348_v3, %s302_s23  ;;  %59 = vrot.lane.b32.xlu0 %v336_v1, %s302_s23 }
  0x26   :  { %65 = vrot.lane.b32.xlu1 %v343_v2, %s302_s23  ;;  %63 = vrot.lane.b32.xlu0 %v331_v0, %s302_s23 }
  0x2a   :  { %48 = vrot.lane.b32.xlu1 %v348_v3, %s303_s24  ;;  %46 = vrot.lane.b32.xlu0 %v336_v1, %s303_s24 }
  0x2e   :  { %52 = vrot.lane.b32.xlu1 %v343_v2, %s303_s24  ;;  %50 = vrot.lane.b32.xlu0 %v331_v0, %s303_s24 }
  0x32   :  { %35 = vrot.lane.b32.xlu1 %v348_v3, %s304_s25  ;;  %33 = vrot.lane.b32.xlu0 %v336_v1, %s304_s25 }
  0x36   :  { %39 = vrot.lane.b32.xlu1 %v343_v2, %s304_s25  ;;  %37 = vrot.lane.b32.xlu0 %v331_v0, %s304_s25 }
  0x3a   :  { %20 = vrot.lane.b32.xlu1 %v348_v3, %s307_s26  ;;  %18 = vrot.lane.b32.xlu0 %v336_v1, %s307_s26 }
  0x3e   :  { %24 = vrot.lane.b32.xlu1 %v343_v2, %s307_s26  ;;  %22 = vrot.lane.b32.xlu0 %v331_v0, %s307_s26 }
  0x42   :  { %128 = vperm.xlu0 %297, %v125_v6  }
  0x74   :  { %v116_v9 = vpop.permute.xlu1 %115  ;;  %v112_v10 = vpop.permute.xlu0 %111 }
  0x78   :  { %v118_v11 = vpop.permute.xlu1 %117  ;;  %v114_v12 = vpop.permute.xlu0 %113 }
  0x79   :  { %v121_v13 = vsel %vm119_vm0, %v114_v12, %v116_v9  ;;  %v123_v14 = vsel %vm119_vm0, %v118_v11, %v112_v10  ;;  %v122_v15 = vsel %vm119_vm0, %v112_v10, %v114_v12  ;;  %v120_v16 = vsel %vm119_vm0, %v116_v9, %v118_v11 }
  0x7a   :  { %149 = vmatprep.subr.mxu0 %v121_v13  ;;  %220 = vmatprep.subr.mxu1 %v123_v14  ;;  %v124_v14 = vld [vmem:[%s414_s1] sm:$0xff] }
  0x7b   :  { %150 = vmatpush1.msra.mxu0 %v122_v15  ;;  %221 = vmatpush1.msra.mxu1 %v120_v16 }
  0x7c   :  { %v101_v17 = vpop.permute.xlu1 %100  ;;  %v99_v18 = vpop.permute.xlu0 %98 }
  0x7d   :  { %v109_v24 = vsel %vm106_vm1, %v99_v18, %v101_v17 }
  0x80   :  { %v105_v19 = vpop.permute.xlu1 %104  ;;  %v103_v20 = vpop.permute.xlu0 %102 }
  0x81   :  { %v108_v21 = vsel %vm106_vm1, %v101_v17, %v103_v20  ;;  %v110_v22 = vsel %vm106_vm1, %v105_v19, %v99_v18  ;;  %v107_v23 = vsel %vm106_vm1, %v103_v20, %v105_v19 }
  0x82   :  { %151 = vmatprep.subr.mxu0 %v108_v21  ;;  %222 = vmatprep.subr.mxu1 %v110_v22 }
  0x83   :  { %152 = vmatpush1.msra.mxu0 %v109_v24  ;;  %223 = vmatpush1.msra.mxu1 %v107_v23 }
  0x84   :  { %v88_v25 = vpop.permute.xlu1 %87  ;;  %v86_v26 = vpop.permute.xlu0 %85 }
  0x85   :  { %v96_v32 = vsel %vm93_vm2, %v86_v26, %v88_v25 }
  0x88   :  { %v92_v27 = vpop.permute.xlu1 %91  ;;  %v90_v28 = vpop.permute.xlu0 %89 }
  0x89   :  { %v95_v29 = vsel %vm93_vm2, %v88_v25, %v90_v28  ;;  %v97_v30 = vsel %vm93_vm2, %v92_v27, %v86_v26  ;;  %v94_v31 = vsel %vm93_vm2, %v90_v28, %v92_v27 }
  0x8a   :  { %153 = vmatprep.subr.mxu0 %v95_v29  ;;  %224 = vmatprep.subr.mxu1 %v97_v30 }
  0x8b   :  { %154 = vmatpush1.msra.mxu0 %v96_v32  ;;  %225 = vmatpush1.msra.mxu1 %v94_v31 }
  0x8c   :  { %v75_v33 = vpop.permute.xlu1 %74  ;;  %v73_v34 = vpop.permute.xlu0 %72 }
  0x8d   :  { %v83_v40 = vsel %vm80_vm3, %v73_v34, %v75_v33 }
  0x90   :  { %v79_v35 = vpop.permute.xlu1 %78  ;;  %v77_v36 = vpop.permute.xlu0 %76 }
  0x91   :  { %v82_v37 = vsel %vm80_vm3, %v75_v33, %v77_v36  ;;  %v84_v38 = vsel %vm80_vm3, %v79_v35, %v73_v34  ;;  %v81_v39 = vsel %vm80_vm3, %v77_v36, %v79_v35 }
  0x92   :  { %155 = vmatprep.subr.mxu0 %v82_v37  ;;  %226 = vmatprep.subr.mxu1 %v84_v38 }
  0x93   :  { %156 = vmatpush1.msra.mxu0 %v83_v40  ;;  %227 = vmatpush1.msra.mxu1 %v81_v39 }
  0x94   :  { %v62_v41 = vpop.permute.xlu1 %61  ;;  %v60_v42 = vpop.permute.xlu0 %59 }
  0x95   :  { %v70_v48 = vsel %vm67_vm4, %v60_v42, %v62_v41 }
  0x98   :  { %v66_v43 = vpop.permute.xlu1 %65  ;;  %v64_v44 = vpop.permute.xlu0 %63 }
  0x99   :  { %v69_v45 = vsel %vm67_vm4, %v62_v41, %v64_v44  ;;  %v71_v46 = vsel %vm67_vm4, %v66_v43, %v60_v42  ;;  %v68_v47 = vsel %vm67_vm4, %v64_v44, %v66_v43 }
  0x9a   :  { %157 = vmatprep.subr.mxu0 %v69_v45  ;;  %228 = vmatprep.subr.mxu1 %v71_v46 }
  0x9b   :  { %158 = vmatpush1.msra.mxu0 %v70_v48  ;;  %229 = vmatpush1.msra.mxu1 %v68_v47 }
  0x9c   :  { %v49_v49 = vpop.permute.xlu1 %48  ;;  %v47_v50 = vpop.permute.xlu0 %46 }
  0x9d   :  { %v57_v56 = vsel %vm54_vm5, %v47_v50, %v49_v49 }
  0xa0   :  { %v53_v51 = vpop.permute.xlu1 %52  ;;  %v51_v52 = vpop.permute.xlu0 %50 }
  0xa1   :  { %v56_v53 = vsel %vm54_vm5, %v49_v49, %v51_v52  ;;  %v58_v54 = vsel %vm54_vm5, %v53_v51, %v47_v50  ;;  %v55_v55 = vsel %vm54_vm5, %v51_v52, %v53_v51 }
  0xa2   :  { %159 = vmatprep.subr.mxu0 %v56_v53  ;;  %230 = vmatprep.subr.mxu1 %v58_v54 }
  0xa3   :  { %160 = vmatpush1.msra.mxu0 %v57_v56  ;;  %231 = vmatpush1.msra.mxu1 %v55_v55 }
  0xa4   :  { %v36_v57 = vpop.permute.xlu1 %35  ;;  %v34_v58 = vpop.permute.xlu0 %33 }
  0xa5   :  { %v44_v4 = vsel %vm41_vm6, %v34_v58, %v36_v57 }
  0xa8   :  { %v40_v59 = vpop.permute.xlu1 %39  ;;  %v38_v60 = vpop.permute.xlu0 %37 }
  0xa9   :  { %v43_v61 = vsel %vm41_vm6, %v36_v57, %v38_v60  ;;  %v45_v62 = vsel %vm41_vm6, %v40_v59, %v34_v58  ;;  %v42_v63 = vsel %vm41_vm6, %v38_v60, %v40_v59 }
  0xaa   :  { %161 = vmatprep.subr.mxu0 %v43_v61  ;;  %232 = vmatprep.subr.mxu1 %v45_v62 }
  0xab   :  { %162 = vmatpush1.msra.mxu0 %v44_v4  ;;  %233 = vmatpush1.msra.mxu1 %v42_v63 }
  0xac   :  { %v21_v5 = vpop.permute.xlu1 %20  ;;  %v19_v6 = vpop.permute.xlu0 %18 }
  0xad   :  { %v31_v13 = vsel %vm28_vm7, %v19_v6, %v21_v5 }
  0xb0   :  { %v25_v7 = vpop.permute.xlu1 %24  ;;  %v23_v9 = vpop.permute.xlu0 %22 }
  0xb1   :  { %v30_v10 = vsel %vm28_vm7, %v21_v5, %v23_v9  ;;  %v32_v11 = vsel %vm28_vm7, %v25_v7, %v19_v6  ;;  %v29_v12 = vsel %vm28_vm7, %v23_v9, %v25_v7 }
  0xb2   :  { %163 = vmatprep.subr.mxu0 %v30_v10  ;;  %234 = vmatprep.subr.mxu1 %v32_v11 }
  0xb3   :  { %164 = vmatpush1.msra.mxu0 %v31_v13  ;;  %235 = vmatpush1.msra.mxu1 %v29_v12 }
  0xb4   :  { %165 = vmatprep.subr.mxu0 %v348_v3  ;;  %236 = vmatprep.subr.mxu1 %v343_v2 }
  0xb5   :  { %166 = vmatpush1.msra.mxu0 %v336_v1  ;;  %237 = vmatpush1.msra.mxu1 %v331_v0 }
  0xb6   :  { %285 = vmatmul.mubr.msk.f32.vlgmr.msra.gmra.mxu0 %vm131_vm8, %v124_v14  ;;  %286 = vmatmul.mubr.msk.f32.vlgmr.msra.gmra.mxu1 %vm131_vm8, %v124_v14 }
  0xbd   :  { %v129_v8 = vpop.permute.xlu0 %128 }
 0x176   :  { %v201_v15 = vpop.f32.mrf.mxu0  ;;  %v272_v16 = vpop.f32.mrf.mxu1 }
 0x177   :  { %v202_v17 = vadd.f32 %v201_v15, %v129_v8  ;;  %v273_v18 = vadd.f32 %v272_v16, %v129_v8 }
 0x178   :  { %v203_v19 = vpop.f32.mrf.mxu0  ;;  %v274_v20 = vpop.f32.mrf.mxu1 }
 0x179   :  { %277 = vst [vmem:[%s415_s3] sm:$0xff] %v202_v17  ;;  %279 = vst [vmem:[%s415_s3 + $0x10] sm:$0xff] %v273_v18  ;;  %v204_v1 = vadd.f32 %v203_v19, %v129_v8  ;;  %v275_v2 = vadd.f32 %v274_v20, %v129_v8 }
 0x17b   :  { %278 = vst [vmem:[%s415_s3 + $0x8] sm:$0xff] %v204_v1  ;;  %280 = vst [vmem:[%s415_s3 + $0x18] sm:$0xff] %v275_v2 }

</bundles_post_ra>
